<compile_context>
chip_gen: v6e
topology: v6e:2x2x1
jax: 0.10.0
libtpu: 0.0.40
codegen_flags: <defaults>
</compile_context>

<pallas_src>
import jax
import jax.numpy as jnp
from jax.experimental import pallas as pl
from jax.experimental.pallas import tpu as pltpu

THRESHOLD = 1.0
INV_THRESHOLD = 1.0 / THRESHOLD
GAMMA = 5.0  # SNode.__init__ default gamma=5

_LANE = 128
_BLOCK_ROWS = 2048  # 1 MiB per f32 block; multiple of 8/16/32 sublane units


def _snode_kernel(x_ref, mem_ref, spike_ref, mem_out_ref):
    # elementwise: accumulate, floor-divide by threshold (as mul), clamp, subtract.
    mem = mem_ref[...] + x_ref[...]
    scaled = mem if THRESHOLD == 1.0 else mem * INV_THRESHOLD
    spike = jnp.clip(jnp.floor(scaled), 0.0, GAMMA)
    spike_ref[...] = spike
    mem_out_ref[...] = mem - spike


def snode_forward(x, mem):
    """Spiking-node forward. x, mem: same shape (e.g. NCHW). Returns (spike, mem_new)."""
    assert x.shape == mem.shape and x.dtype == mem.dtype
    orig_shape = x.shape
    n = x.size
    itemsize = jnp.dtype(x.dtype).itemsize
    sub = {4: 8, 2: 16, 1: 32}.get(itemsize, 8)  # native sublane unit per dtype
    tile = sub * _LANE

    if n % _LANE == 0:
        # Common case (conv activations): zero-copy reshape, no pad, no slice.
        rows = n // _LANE
        x2 = x.reshape(rows, _LANE)
        m2 = mem.reshape(rows, _LANE)
        padded = False
    else:
        # Rare ragged case: pad flat inputs up to a full native tile.
        n_pad = pl.cdiv(n, tile) * tile
        rows = n_pad // _LANE
        x2 = jnp.pad(x.reshape(-1), (0, n_pad - n)).reshape(rows, _LANE)
        m2 = jnp.pad(mem.reshape(-1), (0, n_pad - n)).reshape(rows, _LANE)
        padded = True

    # Big lane-dense blocks; partial last block handled by Pallas masking.
    block_rows = min(rows, _BLOCK_ROWS)
    grid = (pl.cdiv(rows, block_rows),)
    spec = pl.BlockSpec((block_rows, _LANE), lambda i: (i, 0))

    bytes_accessed = 4 * n * itemsize  # 2 reads + 2 writes
    cost = pl.CostEstimate(flops=5 * n, transcendentals=0,
                           bytes_accessed=bytes_accessed)

    spike2, mem2 = pl.pallas_call(
        _snode_kernel,
        out_shape=(
            jax.ShapeDtypeStruct((rows, _LANE), x.dtype),
            jax.ShapeDtypeStruct((rows, _LANE), x.dtype),
        ),
        grid=grid,
        in_specs=[spec, spec],
        out_specs=(spec, spec),
        input_output_aliases={1: 1},  # update mem in place
        compiler_params=pltpu.CompilerParams(
            dimension_semantics=("parallel",),
        ),
        cost_estimate=cost,
    )(x2, m2)

    if padded:
        spike = spike2.reshape(-1)[:n].reshape(orig_shape)
        mem_new = mem2.reshape(-1)[:n].reshape(orig_shape)
    else:
        spike = spike2.reshape(orig_shape)
        mem_new = mem2.reshape(orig_shape)
    return spike, mem_new


def _reference(x, mem):
    mem = mem + x
    spike = jnp.clip(jnp.floor(mem / THRESHOLD), 0.0, GAMMA)
    return spike, mem - spike


if __name__ == "__main__":
    key = jax.random.PRNGKey(0)
    kx, km = jax.random.split(key)
    # NCHW activation, small shapes
    x = jax.random.normal(kx, (2, 4, 16, 16), dtype=jnp.float32) * 3.0
    mem0 = jnp.zeros_like(x)  # module initializes self.mem = 0

    # Compute references first (kernel aliases/donates mem at the XLA level).
    ref_s1, ref_m1 = _reference(x, mem0)
    ref_s2, ref_m2 = _reference(x, ref_m1)

    fwd = jax.jit(snode_forward)
    # First forward call
    spike1, mem1 = fwd(x, mem0)
    # Second forward call on the same input (exercises statefulness)
    spike2, mem2 = fwd(x, mem1)
    jax.block_until_ready((spike1, mem1, spike2, mem2))

    assert jnp.allclose(spike1, ref_s1), "spike1 mismatch"
    assert jnp.allclose(mem1, ref_m1), "mem1 mismatch"
    assert jnp.allclose(spike2, ref_s2), "spike2 mismatch"
    assert jnp.allclose(mem2, ref_m2), "mem2 mismatch"

    print("KERNEL_OK")
</pallas_src>

<mosaic_0001>
module attributes {stable_mosaic.version = 11 : i64} {
  func.func @_snode_kernel(%arg0: i32, %arg1: memref<16x128xf32, #tpu.memory_space<vmem>>, %arg2: memref<16x128xf32, #tpu.memory_space<vmem>>, %arg3: memref<16x128xf32, #tpu.memory_space<vmem>>, %arg4: memref<16x128xf32, #tpu.memory_space<vmem>>) attributes {dimension_semantics = [#tpu.dimension_semantics<parallel>], iteration_bounds = array<i64: 1>, scalar_prefetch = 0 : i64, scratch_operands = 0 : i64, tpu.core_type = #tpu.core_type<tc>, window_params = [{transform_indices = @transform_0, window_bounds = array<i64: 16, 128>}, {transform_indices = @transform_1, window_bounds = array<i64: 16, 128>}, {transform_indices = @transform_2, window_bounds = array<i64: 16, 128>}, {transform_indices = @transform_3, window_bounds = array<i64: 16, 128>}]} {
    %c0 = arith.constant 0 : index
    %c0_0 = arith.constant 0 : index
    %0 = vector.load %arg2[%c0, %c0_0] : memref<16x128xf32, #tpu.memory_space<vmem>>, vector<16x128xf32>
    %c0_1 = arith.constant 0 : index
    %c0_2 = arith.constant 0 : index
    %1 = vector.load %arg1[%c0_1, %c0_2] : memref<16x128xf32, #tpu.memory_space<vmem>>, vector<16x128xf32>
    %2 = arith.addf %0, %1 : vector<16x128xf32>
    %3 = math.floor %2 : vector<16x128xf32>
    %cst = arith.constant 0.000000e+00 : f32
    %cst_3 = arith.constant 5.000000e+00 : f32
    %4 = vector.broadcast %cst : f32 to vector<16x128xf32>
    %5 = arith.maximumf %4, %3 : vector<16x128xf32>
    %6 = vector.broadcast %cst_3 : f32 to vector<16x128xf32>
    %7 = arith.minimumf %6, %5 : vector<16x128xf32>
    %c0_4 = arith.constant 0 : index
    %c0_5 = arith.constant 0 : index
    %8 = vector.load %arg3[%c0_4, %c0_5] : memref<16x128xf32, #tpu.memory_space<vmem>>, vector<16x128xf32>
    tpu.vector_store %arg3[%c0_4, %c0_5], %7 {strides = array<i32>} : memref<16x128xf32, #tpu.memory_space<vmem>>, vector<16x128xf32>,
    %9 = arith.subf %2, %7 : vector<16x128xf32>
    %c0_6 = arith.constant 0 : index
    %c0_7 = arith.constant 0 : index
    %10 = vector.load %arg4[%c0_6, %c0_7] : memref<16x128xf32, #tpu.memory_space<vmem>>, vector<16x128xf32>
    tpu.vector_store %arg4[%c0_6, %c0_7], %9 {strides = array<i32>} : memref<16x128xf32, #tpu.memory_space<vmem>>, vector<16x128xf32>,
    return
  }
  func.func @transform_0(%arg0: i32) -> (i32, i32) {
    %c0_i32 = arith.constant 0 : i32
    %c0_i32_0 = arith.constant 0 : i32
    return %arg0, %c0_i32 : i32, i32
  }
  func.func @transform_1(%arg0: i32) -> (i32, i32) {
    %c0_i32 = arith.constant 0 : i32
    %c0_i32_0 = arith.constant 0 : i32
    return %arg0, %c0_i32 : i32, i32
  }
  func.func @transform_2(%arg0: i32) -> (i32, i32) {
    %c0_i32 = arith.constant 0 : i32
    %c0_i32_0 = arith.constant 0 : i32
    return %arg0, %c0_i32 : i32, i32
  }
  func.func @transform_3(%arg0: i32) -> (i32, i32) {
    %c0_i32 = arith.constant 0 : i32
    %c0_i32_0 = arith.constant 0 : i32
    return %arg0, %c0_i32 : i32, i32
  }
}

</mosaic_0001>

<bundles_post_ra>
// kernel: snode_forward.1
= control target key start
LH: loop header
LB: loop body
LE: loop exit
PB: predicated region body
PF: predicated region fallthrough
CT: control target
= control target key end

     0   :  { %s83_s0 = inlined_call_operand.vmem [shape: f32[16,128], index: 0, kind: input, shape index: {}]   ;;  %s84_s1 = inlined_call_operand.vmem [shape: f32[16,128], index: 1, kind: input, shape index: {}, may-alias: {1,3}]   ;;  %s85_s2 = inlined_call_operand.vmem [shape: f32[16,128], index: 2, kind: output, shape index: {0}]   ;;  %s86_s3 = inlined_call_operand.vmem [shape: f32[16,128], index: 3, kind: output, shape index: {1}, may-alias: {1,3}]  }
   0x1   :  { %v13_v0 = vld [vmem:[%s84_s1] sm:$0xff]  ;;  %v14_v2 = vld [vmem:[%s84_s1 + $0x8] sm:$0xff] }
   0x2   :  { %v15_v1 = vld [vmem:[%s83_s0] sm:$0xff]  ;;  %v16_v4 = vld [vmem:[%s83_s0 + $0x8] sm:$0xff] }
   0x3   :  { %v17_v3 = vadd.f32 %v15_v1, %v13_v0  ;;  %v18_v5 = vadd.f32 %v16_v4, %v14_v2 }
   0x5   :  { %v19_v6 = vfloor.f32 %v17_v3  ;;  %v20_v7 = vfloor.f32 %v18_v5 }
   0x7   :  { %v21_v8 = vmax.f32 %v19_v6, 0.0  ;;  %v22_v9 = vmax.f32 %v20_v7, 0.0 }
   0x9   :  { %v23_v10 = vmin.f32 %v21_v8, 5.0  ;;  %v24_v11 = vmin.f32 %v22_v9, 5.0 }
   0xb   :  { %25 = vst [vmem:[%s85_s2] sm:$0xff] %v23_v10  ;;  %v27_v12 = vsub.f32 %v17_v3, %v23_v10  ;;  %26 = vst [vmem:[%s85_s2 + $0x8] sm:$0xff] %v24_v11  ;;  %v28_v13 = vsub.f32 %v18_v5, %v24_v11 }
   0xd   :  { %29 = vst [vmem:[%s86_s3] sm:$0xff] %v27_v12  ;;  %30 = vst [vmem:[%s86_s3 + $0x8] sm:$0xff] %v28_v13 }

</bundles_post_ra>
